<compile_context>
chip_gen: v5e
topology: v5e:2x2
jax: 0.10.0
libtpu: 0.0.40
codegen_flags: <defaults>
</compile_context>

<pallas_src>
import functools

import jax
import jax.numpy as jnp
from jax.experimental import pallas as pl
from jax.experimental.pallas import tpu as pltpu

LANE = 128
SUBLANE = 8
ACC_ROWS = 32                        # widened partial-sum accumulator (ILP)
BLOCK_BYTES = 4 * 1024 * 1024        # per-input per-step DMA, dtype independent
VMEM_LIMIT_BYTES = 32 * 1024 * 1024  # 2 inputs x 2 bufs x 4 MiB = 16 MiB + slack
NUM_CORE_SPLITS = 2                  # leading "parallel" axis (v7x megacore)


def _rmse_clip_kernel(y_ref, t_ref, out_ref, acc_ref, *, min_value, max_value,
                      slab_elems, block_rows, acc_rows, steps_per_split,
                      mask_possible):
    c = pl.program_id(0)             # core-split index   ("parallel")
    j = pl.program_id(1)             # streaming step      ("arbitrary")

    @pl.when(j == 0)
    def _():
        acc_ref[...] = jnp.zeros_like(acc_ref)

    y = jnp.clip(y_ref[...].astype(jnp.float32),
                 jnp.float32(min_value), jnp.float32(max_value))
    t = t_ref[...].astype(jnp.float32)
    d = t - y
    sq = d * d

    def accumulate(x):
        # Fold the block into the persistent (acc_rows, 128) accumulator:
        # pure VPU adds, no cross-lane traffic in the steady state.
        acc_ref[...] += x.reshape(block_rows // acc_rows, acc_rows, LANE).sum(axis=0)

    if mask_possible:
        block_elems = block_rows * LANE
        base = (c * steps_per_split + j) * block_elems
        # Only boundary / phantom blocks can contain out-of-range elements.
        needs_mask = base > (slab_elems - block_elems)

        @pl.when(needs_mask)
        def _():
            row = jax.lax.broadcasted_iota(jnp.int32, (block_rows, LANE), 0)
            lane = jax.lax.broadcasted_iota(jnp.int32, (block_rows, LANE), 1)
            local = row * LANE + lane        # block-local index: no i32 overflow
            rem = slab_elems - base          # <= 0 for fully-phantom blocks
            accumulate(jnp.where(local < rem, sq, jnp.float32(0.0)))

        @pl.when(jnp.logical_not(needs_mask))
        def _():
            accumulate(sq)
    else:
        accumulate(sq)

    @pl.when(j == steps_per_split - 1)
    def _():
        out_ref[0, 0] = jnp.sum(acc_ref[...])   # single final cross-lane reduce


def rmse_with_clip(y, t, min_value, max_value):
    """Pallas implementation of RMSEWithClip.forward (metric, scalar out)."""
    assert y.shape == t.shape
    n_elems = int(y.size)
    assert n_elems > 0
    # TODO(synk): block-index math is int32; >2^31 elements would need 64-bit
    # (or per-split offsets) — not supported here.
    assert n_elems < 2**31

    main_len = (n_elems // LANE) * LANE
    tail = n_elems - main_len

    # Sub-128 remainder: sum it in plain JAX instead of padding both inputs
    # (padding via concatenate would copy the whole input -> ~2x HBM traffic).
    if tail > 0:
        y_t = jnp.clip(y.reshape(-1)[main_len:].astype(jnp.float32),
                       jnp.float32(min_value), jnp.float32(max_value))
        t_t = t.reshape(-1)[main_len:].astype(jnp.float32)
        tail_sum = jnp.sum((t_t - y_t) ** 2)
    else:
        tail_sum = jnp.float32(0.0)

    inv_n = jnp.float32(1.0 / n_elems)   # reciprocal computed on host in f64

    if main_len == 0:                     # input smaller than one lane row
        return jnp.sqrt(tail_sum * inv_n)

    rows = main_len // LANE
    itemsize = max(jnp.dtype(y.dtype).itemsize, jnp.dtype(t.dtype).itemsize)
    max_rows = max(ACC_ROWS,
                   (BLOCK_BYTES // (LANE * itemsize)) // ACC_ROWS * ACC_ROWS)
    block_rows = min(rows, max_rows)      # = rows (full dim) or multiple of 32

    if block_rows % ACC_ROWS == 0:
        acc_rows = ACC_ROWS
    elif block_rows % SUBLANE == 0:
        acc_rows = SUBLANE
    else:
        acc_rows = block_rows             # tiny input: single fold group

    total_blocks = pl.cdiv(rows, block_rows)
    num_splits = NUM_CORE_SPLITS if total_blocks >= NUM_CORE_SPLITS else 1
    steps_per_split = pl.cdiv(total_blocks, num_splits)
    grid_blocks = num_splits * steps_per_split
    mask_possible = (rows % block_rows != 0) or (grid_blocks != total_blocks)

    def slab(x):
        xf = x.reshape(-1)
        if tail > 0:
            xf = xf[:main_len]            # static slice; tail handled above
        return xf.reshape(rows, LANE)     # zero-copy when tail == 0

    def in_map(c, j):
        # Clamp phantom blocks (only exist when total_blocks % num_splits != 0);
        # their contribution is fully masked to zero inside the kernel.
        return (jnp.minimum(c * steps_per_split + j, total_blocks - 1), 0)

    kernel = functools.partial(
        _rmse_clip_kernel,
        min_value=float(min_value),
        max_value=float(max_value),
        slab_elems=main_len,
        block_rows=block_rows,
        acc_rows=acc_rows,
        steps_per_split=steps_per_split,
        mask_possible=mask_possible,
    )

    partials = pl.pallas_call(
        kernel,
        out_shape=jax.ShapeDtypeStruct((num_splits, 1), jnp.float32),
        grid_spec=pltpu.PrefetchScalarGridSpec(
            num_scalar_prefetch=0,
            grid=(num_splits, steps_per_split),
            in_specs=[
                pl.BlockSpec((block_rows, LANE), in_map),
                pl.BlockSpec((block_rows, LANE), in_map),
            ],
            out_specs=pl.BlockSpec((1, 1), lambda c, j: (c, 0),
                                   memory_space=pltpu.SMEM),
            scratch_shapes=[pltpu.VMEM((acc_rows, LANE), jnp.float32)],
        ),
        compiler_params=pltpu.CompilerParams(
            dimension_semantics=("parallel", "arbitrary"),
            vmem_limit_bytes=VMEM_LIMIT_BYTES,
        ),
    )(slab(y), slab(t))

    total = jnp.sum(partials) + tail_sum
    return jnp.sqrt(total * inv_n)


if __name__ == "__main__":
    # Module config (deterministic, in-script).
    min_value, max_value = 0, 4

    key = jax.random.PRNGKey(0)
    ky, kt = jax.random.split(key)
    # NCHW-like small shapes (batch=2, channels=4, spatial=16).
    y = jax.random.normal(ky, (2, 4, 16, 16), dtype=jnp.float32) * 3.0 + 2.0
    t = jax.random.uniform(kt, (2, 4, 16, 16), dtype=jnp.float32,
                           minval=float(min_value), maxval=float(max_value))

    out = rmse_with_clip(y, t, min_value, max_value)
    out = jax.block_until_ready(out)

    # Reference check in plain JAX (mirrors numpy semantics of the module).
    ref = jnp.sqrt(jnp.mean((t - jnp.clip(y, min_value, max_value)) ** 2))
    assert jnp.allclose(out, ref, rtol=1e-5, atol=1e-5), (out, ref)

    print("KERNEL_OK")
</pallas_src>

<mosaic_0001>
module attributes {stable_mosaic.version = 11 : i64} {
  func.func @_rmse_clip_kernel(%arg0: i32, %arg1: i32, %arg2: memref<16x128xf32, #tpu.memory_space<vmem>>, %arg3: memref<16x128xf32, #tpu.memory_space<vmem>>, %arg4: memref<1x1xf32, #tpu.memory_space<smem>>, %arg5: memref<8x128xf32, #tpu.memory_space<vmem>>) attributes {dimension_semantics = [#tpu.dimension_semantics<parallel>, #tpu.dimension_semantics<arbitrary>], iteration_bounds = array<i64: 1, 1>, scalar_prefetch = 0 : i64, scratch_operands = 1 : i64, tpu.core_type = #tpu.core_type<tc>, window_params = [{transform_indices = @transform_0, window_bounds = array<i64: 16, 128>}, {transform_indices = @transform_1, window_bounds = array<i64: 16, 128>}, {transform_indices = @transform_2, window_bounds = array<i64: 1, 1>}]} {
    %c0_i32 = arith.constant 0 : i32
    %0 = arith.cmpi eq, %arg1, %c0_i32 : i32
    %1 = arith.extui %0 : i1 to i32
    %c0_i32_0 = arith.constant 0 : i32
    %2 = arith.cmpi ne, %1, %c0_i32_0 : i32
    scf.if %2 {
      %cst_12 = arith.constant 0.000000e+00 : f32
      %19 = vector.broadcast %cst_12 : f32 to vector<8x128xf32>
      %c0_13 = arith.constant 0 : index
      %c0_14 = arith.constant 0 : index
      %20 = vector.load %arg5[%c0_13, %c0_14] : memref<8x128xf32, #tpu.memory_space<vmem>>, vector<8x128xf32>
      tpu.vector_store %arg5[%c0_13, %c0_14], %19 {strides = array<i32>} : memref<8x128xf32, #tpu.memory_space<vmem>>, vector<8x128xf32>,
    } else {
    }
    %c0 = arith.constant 0 : index
    %c0_1 = arith.constant 0 : index
    %3 = vector.load %arg2[%c0, %c0_1] : memref<16x128xf32, #tpu.memory_space<vmem>>, vector<16x128xf32>
    %cst = arith.constant 0.000000e+00 : f32
    %cst_2 = arith.constant 4.000000e+00 : f32
    %4 = vector.broadcast %cst : f32 to vector<16x128xf32>
    %5 = arith.maximumf %4, %3 : vector<16x128xf32>
    %6 = vector.broadcast %cst_2 : f32 to vector<16x128xf32>
    %7 = arith.minimumf %6, %5 : vector<16x128xf32>
    %c0_3 = arith.constant 0 : index
    %c0_4 = arith.constant 0 : index
    %8 = vector.load %arg3[%c0_3, %c0_4] : memref<16x128xf32, #tpu.memory_space<vmem>>, vector<16x128xf32>
    %9 = arith.subf %8, %7 : vector<16x128xf32>
    %10 = arith.mulf %9, %9 : vector<16x128xf32>
    %c0_5 = arith.constant 0 : index
    %c0_6 = arith.constant 0 : index
    %11 = vector.load %arg5[%c0_5, %c0_6] : memref<8x128xf32, #tpu.memory_space<vmem>>, vector<8x128xf32>
    %12 = vector.shape_cast %10 : vector<16x128xf32> to vector<2x8x128xf32>
    %cst_7 = arith.constant dense<0.000000e+00> : vector<8x128xf32>
    %13 = vector.multi_reduction <add>, %12, %cst_7 [0] : vector<2x8x128xf32> to vector<8x128xf32>
    %14 = arith.addf %11, %13 : vector<8x128xf32>
    %c0_8 = arith.constant 0 : index
    %c0_9 = arith.constant 0 : index
    %15 = vector.load %arg5[%c0_8, %c0_9] : memref<8x128xf32, #tpu.memory_space<vmem>>, vector<8x128xf32>
    tpu.vector_store %arg5[%c0_8, %c0_9], %14 {strides = array<i32>} : memref<8x128xf32, #tpu.memory_space<vmem>>, vector<8x128xf32>,
    %c0_i32_10 = arith.constant 0 : i32
    %16 = arith.cmpi eq, %arg1, %c0_i32_10 : i32
    %17 = arith.extui %16 : i1 to i32
    %c0_i32_11 = arith.constant 0 : i32
    %18 = arith.cmpi ne, %17, %c0_i32_11 : i32
    scf.if %18 {
      %c0_12 = arith.constant 0 : index
      %c0_13 = arith.constant 0 : index
      %19 = vector.load %arg5[%c0_12, %c0_13] : memref<8x128xf32, #tpu.memory_space<vmem>>, vector<8x128xf32>
      %20 = vector.shape_cast %19 : vector<8x128xf32> to vector<1x8x128xf32>
      %cst_14 = arith.constant dense<0.000000e+00> : vector<1xf32>
      %21 = vector.multi_reduction <add>, %20, %cst_14 [1, 2] : vector<1x8x128xf32> to vector<1xf32>
      %22 = vector.shape_cast %21 : vector<1xf32> to vector<1x1x1xf32>
      %23 = vector.extract %22[0, 0, 0] : f32 from vector<1x1x1xf32>
      %c0_15 = arith.constant 0 : index
      %c0_16 = arith.constant 0 : index
      %24 = memref.load %arg4[%c0_15, %c0_16] : memref<1x1xf32, #tpu.memory_space<smem>>
      memref.store %23, %arg4[%c0_15, %c0_16] : memref<1x1xf32, #tpu.memory_space<smem>>
    } else {
    }
    return
  }
  func.func @transform_0(%arg0: i32, %arg1: i32) -> (i32, i32) {
    %c1_i32 = arith.constant 1 : i32
    %0 = arith.muli %arg0, %c1_i32 : i32
    %1 = arith.addi %0, %arg1 : i32
    %c0_i32 = arith.constant 0 : i32
    %2 = arith.minsi %1, %c0_i32 : i32
    %c0_i32_0 = arith.constant 0 : i32
    %c0_i32_1 = arith.constant 0 : i32
    return %2, %c0_i32_0 : i32, i32
  }
  func.func @transform_1(%arg0: i32, %arg1: i32) -> (i32, i32) {
    %c1_i32 = arith.constant 1 : i32
    %0 = arith.muli %arg0, %c1_i32 : i32
    %1 = arith.addi %0, %arg1 : i32
    %c0_i32 = arith.constant 0 : i32
    %2 = arith.minsi %1, %c0_i32 : i32
    %c0_i32_0 = arith.constant 0 : i32
    %c0_i32_1 = arith.constant 0 : i32
    return %2, %c0_i32_0 : i32, i32
  }
  func.func @transform_2(%arg0: i32, %arg1: i32) -> (i32, i32) {
    %c0_i32 = arith.constant 0 : i32
    %c0_i32_0 = arith.constant 0 : i32
    return %arg0, %c0_i32 : i32, i32
  }
}

</mosaic_0001>

<bundles_post_ra>
// kernel: tpu_custom_call.1
= control target key start
LH: loop header
LB: loop body
LE: loop exit
PB: predicated region body
PF: predicated region fallthrough
CT: control target
= control target key end

     0   :  { %7 = vsyncpa [#allocation4], 0  ;;  %s223_s0 = inlined_call_operand.hbm [shape: f32[16,128], index: 0, kind: input, shape index: {}]   ;;  %s224_s1 = inlined_call_operand.hbm [shape: f32[16,128], index: 1, kind: input, shape index: {}]   ;;  %s225_s2 = inlined_call_operand.hbm [shape: f32[1,1], index: 2, kind: output, shape index: {}]  }
   0x1   :  { %8 = vsyncpa [#allocation7], 0 }
   0x2   :  { %9 = vsyncpa [#allocation5], 0  ;;  %s20_s11 = sshll.u32 %s223_s0, 4  ;;  %s194_s12 = smov [#allocation3]   ;;  %s21_s11 = int_to_ptr.hbm [resolvable:$true] %s20_s11 }
   0x3   :  { %s22_s13 = sshll.u32 %s194_s12, 4  ;;  %s39_s16 = sshll.u32 %s224_s1, 4  ;;  %s23_s13 = int_to_ptr.vmem [resolvable:$true] %s22_s13  ;;  %s40_s16 = int_to_ptr.hbm [resolvable:$true] %s39_s16 }
   0x4   :  { %s195_s17 = smov 128   ;;  %s196_s18 = smov 8  }
   0x5   :  { %28 = dma.hbm_to_vmem [thread:$0]  %s21_s11, 256, %s23_s13, [#allocation4], %s195_s17, %s195_s17, %s196_s18  }
   0x6   :  { %s197_s19 = smov [#allocation6]  }
   0x7   :  { %s41_s20 = sshll.u32 %s197_s19, 4  ;;  %s42_s20 = int_to_ptr.vmem [resolvable:$true] %s41_s20 }
   0x8   :  { %47 = dma.hbm_to_vmem [thread:$0]  %s40_s16, 256, %s42_s20, [#allocation7], %s195_s17, %s195_s17, %s196_s18  }
   0x9   :  { %188 = dma.done.wait [#allocation4], 256  }
   0xa   :  { %189 = vsyncadd [#allocation4], 4294967040 }
   0xb   :  { %190 = dma.done.wait [#allocation7], 256  }
   0xc   :  { %191 = vsyncadd [#allocation7], 4294967040  ;;  %v69_v0 = vld [vmem:[#allocation3] sm:$0xff]  ;;  %v70_v1 = vld [vmem:[#allocation3 + $0x8] sm:$0xff]  ;;  %s105_s21 = sshll.u32 %s225_s2, 4  ;;  %s198_s23 = smov [#allocation8]   ;;  %s106_s21 = int_to_ptr.hbm [resolvable:$true] %s105_s21 }
   0xd   :  { %v71_v2 = vmax.f32 %v69_v0, 0.0  ;;  %v72_v3 = vmax.f32 %v70_v1, 0.0  ;;  %v75_v4 = vld [vmem:[#allocation6] sm:$0xff]  ;;  %v76_v5 = vld [vmem:[#allocation6 + $0x8] sm:$0xff] }
   0xf   :  { %v73_v6 = vmin.f32 %v71_v2, 4.0  ;;  %v74_v7 = vmin.f32 %v72_v3, 4.0 }
  0x11   :  { %v77_v8 = vsub.f32 %v75_v4, %v73_v6  ;;  %v78_v9 = vsub.f32 %v76_v5, %v74_v7 }
  0x13   :  { %v79_v10 = vmul.f32 %v77_v8, %v77_v8  ;;  %v80_v11 = vmul.f32 %v78_v9, %v78_v9 }
  0x15   :  { %v82_v12 = vadd.f32 %v80_v11, %v79_v10 }
  0x17   :  { %89 = vadd.xlane.f32.xlu0 %v82_v12 }
  0x8a   :  { %v90_v13 = vpop.xlane.xlu0 %89 }
  0x8b   :  { %v91_v14 = vrot.slane %v90_v13, 4 }
  0x8d   :  { %v92_v15 = vadd.f32 %v91_v14, %v90_v13 }
  0x8f   :  { %v93_v16 = vrot.slane %v92_v15, 2 }
  0x91   :  { %v94_v17 = vadd.f32 %v93_v16, %v92_v15 }
  0x93   :  { %v95_v18 = vrot.slane %v94_v17, 1 }
  0x95   :  { %v96_v19 = vadd.f32 %v95_v18, %v94_v17 }
  0x97   :  { %121 = vpush %v96_v19 }
  0xc8   :  { %s122_s22 = spop %121 }
  0xc9   :  { %99 = sst [smem:[#allocation8]] %s122_s22 }
  0xca   :  { %108 = dma.smem_to_hbm %s198_s23, 16, %s106_s21, [#allocation5]  }
  0xcb   :  { %192 = dma.done.wait [#allocation5], 16  }
  0xcc   :  { %193 = vsyncadd [#allocation5], 4294967280 }
  0xcd   :  { %113 = sfence }
  0xce   :  { %114 = vsyncpa [#allocation4], 1 }
  0xcf   :  { %115 = vsyncpa [#allocation7], 1 }
  0xd0   :  { %116 = vsyncpa [#allocation5], 1 }

</bundles_post_ra>
